<compile_context>
chip_gen: v7x
topology: tpu7x:2x2x1
jax: 0.10.0
libtpu: 0.0.40
codegen_flags: <defaults>
</compile_context>

<pallas_src>
import functools

import jax
import jax.numpy as jnp
from jax.experimental import pallas as pl
from jax.experimental.pallas import tpu as pltpu


def _csa_kernel(x_ref, wqkv_ref, bqkv_ref, wp_ref, bp_ref, y_ref, attn_ref,
                *, n_head, matmul_dtype):
    bb, L, C = x_ref.shape
    hd = C // n_head
    scale = 1.0 / (hd ** 0.5)

    # ---- Fused QKV projection on the flattened (bb*L, C) activation block ----
    x2 = x_ref[...].reshape(bb * L, C)
    qkv = jnp.dot(x2, wqkv_ref[...],
                  preferred_element_type=jnp.float32) + bqkv_ref[...]   # (bb*L, 3C) f32

    # Split; fold 1/sqrt(hd) into q; restore the leading batch dim for batched dots.
    q = (qkv[:, :C] * scale).reshape(bb, L, C).astype(matmul_dtype)
    k = qkv[:, C:2 * C].reshape(bb, L, C).astype(matmul_dtype)
    v = qkv[:, 2 * C:].reshape(bb, L, C).astype(matmul_dtype)

    # Causal mask (2-D iota, TPU requirement), hoisted out of the head loop.
    row = jax.lax.broadcasted_iota(jnp.int32, (L, L), 0)
    col = jax.lax.broadcasted_iota(jnp.int32, (L, L), 1)
    causal = (col <= row)[None, :, :]                                    # (1, L, L)

    p_heads = []
    y_heads = []
    for h in range(n_head):                      # static unroll over heads
        sl = slice(h * hd, (h + 1) * hd)
        qh, kh, vh = q[:, :, sl], k[:, :, sl], v[:, :, sl]

        # Scores: contract the last dims of both operands (no explicit transpose).
        s = jnp.einsum('bqd,bkd->bqk', qh, kh,
                       preferred_element_type=jnp.float32)               # (bb, L, L)
        s = jnp.where(causal, s, -jnp.inf)

        # Softmax in f32; denominator via approximate reciprocal on the EUP.
        m = jnp.max(s, axis=-1, keepdims=True)
        e = jnp.exp(s - m)
        p = e * pl.reciprocal(jnp.sum(e, axis=-1, keepdims=True), approx=True)
        p_heads.append(p)

        y_heads.append(jnp.einsum('bqk,bkd->bqd', p.astype(matmul_dtype), vh,
                                  preferred_element_type=jnp.float32))   # (bb, L, hd)

    # Single store of the whole attention map for this block.
    attn_ref[...] = jnp.stack(p_heads, axis=1)                           # (bb, H, L, L)

    # Merge heads (channel-major, matching torch .transpose(1,2).view(B,L,C)),
    # then one fused output-projection matmul for the whole block.
    y = jnp.concatenate(y_heads, axis=-1).reshape(bb * L, C)
    out = jnp.dot(y.astype(matmul_dtype), wp_ref[...],
                  preferred_element_type=jnp.float32) + bp_ref[...]
    y_ref[...] = out.reshape(bb, L, C).astype(y_ref.dtype)


def csa_block(x, params, n_head, *, batch_block=None, matmul_dtype=jnp.float32):
    """x: (B, L, C) float32.  params: dict of pre-transposed (in, out) weights + (1, out) biases.

    matmul_dtype: dtype of the MXU matmul operands (jnp.bfloat16 recommended on
    v6e/v7x); softmax and accumulation always stay float32.
    """
    B, L, C = x.shape
    if batch_block is None:
        batch_block = B                      # whole batch in one grid step for small problems
    assert B % batch_block == 0
    num_blocks = B // batch_block

    # Fuse Q/K/V weights into one (C, 3C) matrix and biases into (1, 3C).
    wqkv = jnp.concatenate([params["wq"], params["wk"], params["wv"]], axis=1).astype(matmul_dtype)
    bqkv = jnp.concatenate([params["bq"], params["bk"], params["bv"]], axis=1).astype(jnp.float32)
    wp = params["wp"].astype(matmul_dtype)
    bp = params["bp"].astype(jnp.float32)
    xc = x.astype(matmul_dtype)

    kernel = functools.partial(_csa_kernel, n_head=n_head, matmul_dtype=matmul_dtype)

    y, attn = pl.pallas_call(
        kernel,
        out_shape=(
            jax.ShapeDtypeStruct((B, L, C), jnp.float32),
            jax.ShapeDtypeStruct((B, n_head, L, L), jnp.float32),
        ),
        grid_spec=pltpu.PrefetchScalarGridSpec(
            num_scalar_prefetch=0,
            grid=(num_blocks,),
            in_specs=[
                pl.BlockSpec((batch_block, L, C), lambda b: (b, 0, 0)),   # x
                pl.BlockSpec((C, 3 * C), lambda b: (0, 0)),               # fused Wqkv
                pl.BlockSpec((1, 3 * C), lambda b: (0, 0)),               # fused bqkv
                pl.BlockSpec((C, C), lambda b: (0, 0)),                   # Wproj
                pl.BlockSpec((1, C), lambda b: (0, 0)),                   # bproj
            ],
            out_specs=[
                pl.BlockSpec((batch_block, L, C), lambda b: (b, 0, 0)),
                pl.BlockSpec((batch_block, n_head, L, L), lambda b: (b, 0, 0, 0)),
            ],
        ),
        compiler_params=pltpu.CompilerParams(
            dimension_semantics=("parallel",)),
    )(xc, wqkv, bqkv, wp, bp)
    return y, attn


def _reference(x, params, n_head):
    """Pure-JAX reference mirroring the PyTorch forward (eval mode)."""
    B, L, C = x.shape
    hd = C // n_head

    def lin(x, w, b):
        return x @ w + b[0]

    q = lin(x, params["wq"], params["bq"]).reshape(B, L, n_head, hd).transpose(0, 2, 1, 3)
    k = lin(x, params["wk"], params["bk"]).reshape(B, L, n_head, hd).transpose(0, 2, 1, 3)
    v = lin(x, params["wv"], params["bv"]).reshape(B, L, n_head, hd).transpose(0, 2, 1, 3)

    s = jnp.einsum("bhqd,bhkd->bhqk", q, k) / (hd ** 0.5)
    mask = jnp.tril(jnp.ones((L, L), dtype=bool))
    s = jnp.where(mask[None, None], s, -jnp.inf)
    attn = jax.nn.softmax(s, axis=-1)
    y = jnp.einsum("bhqk,bhkd->bhqd", attn, v).transpose(0, 2, 1, 3).reshape(B, L, C)
    y = lin(y, params["wp"], params["bp"])
    return y, attn


if __name__ == "__main__":
    # Small config consistent with the module: B=2, L=8 (== block_size), C=32, 4 heads.
    B, L, C, n_head = 2, 8, 32, 4

    key = jax.random.PRNGKey(0)
    ks = jax.random.split(key, 9)
    init = lambda k, shape, scale=0.1: (scale * jax.random.normal(k, shape)).astype(jnp.float32)

    # Weights stored pre-transposed: (in, out), so the kernel computes x @ W + b.
    params = {
        "wq": init(ks[0], (C, C)), "bq": init(ks[1], (1, C)),
        "wk": init(ks[2], (C, C)), "bk": init(ks[3], (1, C)),
        "wv": init(ks[4], (C, C)), "bv": init(ks[5], (1, C)),
        "wp": init(ks[6], (C, C)), "bp": init(ks[7], (1, C)),
    }
    x = jax.random.normal(ks[8], (B, L, C), dtype=jnp.float32)

    y_ref, attn_ref = _reference(x, params, n_head)

    # Full-precision (f32 matmul operands) run.
    y, attn = csa_block(x, params, n_head)
    y = jax.block_until_ready(y)
    attn = jax.block_until_ready(attn)
    assert jnp.allclose(y, y_ref, atol=2e-3, rtol=2e-3), "y mismatch (f32)"
    assert jnp.allclose(attn, attn_ref, atol=2e-3, rtol=2e-3), "attn mismatch (f32)"

    # bf16 matmul-operand run (v6e/v7x recipe); softmax stays f32, so only
    # matmul-operand rounding differs from the reference.
    y16, attn16 = csa_block(x, params, n_head, matmul_dtype=jnp.bfloat16)
    y16 = jax.block_until_ready(y16)
    attn16 = jax.block_until_ready(attn16)
    assert jnp.allclose(y16, y_ref, atol=1e-1, rtol=1e-1), "y mismatch (bf16)"
    assert jnp.allclose(attn16, attn_ref, atol=5e-2, rtol=5e-2), "attn mismatch (bf16)"

    print("KERNEL_OK")
</pallas_src>

<mosaic_0001>
module attributes {stable_mosaic.version = 11 : i64} {
  func.func @_csa_kernel(%arg0: i32, %arg1: memref<2x8x32xf32, #tpu.memory_space<vmem>>, %arg2: memref<32x96xf32, #tpu.memory_space<vmem>>, %arg3: memref<1x96xf32, #tpu.memory_space<vmem>>, %arg4: memref<32x32xf32, #tpu.memory_space<vmem>>, %arg5: memref<1x32xf32, #tpu.memory_space<vmem>>, %arg6: memref<2x8x32xf32, #tpu.memory_space<vmem>>, %arg7: memref<2x4x8x8xf32, #tpu.memory_space<vmem>>) attributes {dimension_semantics = [#tpu.dimension_semantics<parallel>], iteration_bounds = array<i64: 1>, scalar_prefetch = 0 : i64, scratch_operands = 0 : i64, tpu.core_type = #tpu.core_type<tc>, window_params = [{transform_indices = @transform_0, window_bounds = array<i64: 2, 8, 32>}, {pipeline_mode = #tpu.pipeline_mode<synchronous>, transform_indices = @transform_1, window_bounds = array<i64: 32, 96>}, {pipeline_mode = #tpu.pipeline_mode<synchronous>, transform_indices = @transform_2, window_bounds = array<i64: 1, 96>}, {pipeline_mode = #tpu.pipeline_mode<synchronous>, transform_indices = @transform_3, window_bounds = array<i64: 32, 32>}, {pipeline_mode = #tpu.pipeline_mode<synchronous>, transform_indices = @transform_4, window_bounds = array<i64: 1, 32>}, {transform_indices = @transform_5, window_bounds = array<i64: 2, 8, 32>}, {transform_indices = @transform_6, window_bounds = array<i64: 2, 4, 8, 8>}]} {
    %c0 = arith.constant 0 : index
    %c0_0 = arith.constant 0 : index
    %c0_1 = arith.constant 0 : index
    %0 = vector.load %arg1[%c0, %c0_0, %c0_1] : memref<2x8x32xf32, #tpu.memory_space<vmem>>, vector<2x8x32xf32>
    %1 = vector.shape_cast %0 : vector<2x8x32xf32> to vector<16x32xf32>
    %c0_2 = arith.constant 0 : index
    %c0_3 = arith.constant 0 : index
    %2 = vector.load %arg2[%c0_2, %c0_3] : memref<32x96xf32, #tpu.memory_space<vmem>>, vector<32x96xf32>
    %cst = arith.constant dense<0.000000e+00> : vector<16x96xf32>
    %3 = tpu.matmul %1, %2, %cst {dimension_numbers = #tpu.dot_dimension_numbers<[1], [0], [0], [1], [0, 0, 1, 1], [], []>} : vector<16x32xf32>, vector<32x96xf32>, vector<16x96xf32> -> vector<16x96xf32>
    %c0_4 = arith.constant 0 : index
    %c0_5 = arith.constant 0 : index
    %4 = vector.load %arg3[%c0_4, %c0_5] : memref<1x96xf32, #tpu.memory_space<vmem>>, vector<1x96xf32>
    %5 = vector.broadcast %4 : vector<1x96xf32> to vector<16x96xf32>
    %6 = arith.addf %3, %5 : vector<16x96xf32>
    %7 = vector.extract_strided_slice %6 {offsets = [0, 0], sizes = [16, 32], strides = [1, 1]} : vector<16x96xf32> to vector<16x32xf32>
    %cst_6 = arith.constant 0.353553385 : f32
    %8 = vector.broadcast %cst_6 : f32 to vector<16x32xf32>
    %9 = arith.mulf %7, %8 : vector<16x32xf32>
    %10 = vector.shape_cast %9 : vector<16x32xf32> to vector<2x8x32xf32>
    %11 = vector.extract_strided_slice %6 {offsets = [0, 32], sizes = [16, 32], strides = [1, 1]} : vector<16x96xf32> to vector<16x32xf32>
    %12 = vector.shape_cast %11 : vector<16x32xf32> to vector<2x8x32xf32>
    %13 = vector.extract_strided_slice %6 {offsets = [0, 64], sizes = [16, 32], strides = [1, 1]} : vector<16x96xf32> to vector<16x32xf32>
    %14 = vector.shape_cast %13 : vector<16x32xf32> to vector<2x8x32xf32>
    %15 = tpu.iota {dimensions = array<i32: 0>} : vector<8x8xi32>
    %16 = tpu.iota {dimensions = array<i32: 1>} : vector<8x8xi32>
    %17 = arith.cmpi sle, %16, %15 : vector<8x8xi32>
    %18 = vector.shape_cast %17 : vector<8x8xi1> to vector<1x8x8xi1>
    %19 = vector.extract_strided_slice %10 {offsets = [0, 0, 0], sizes = [2, 8, 8], strides = [1, 1, 1]} : vector<2x8x32xf32> to vector<2x8x8xf32>
    %20 = vector.extract_strided_slice %12 {offsets = [0, 0, 0], sizes = [2, 8, 8], strides = [1, 1, 1]} : vector<2x8x32xf32> to vector<2x8x8xf32>
    %21 = vector.extract_strided_slice %14 {offsets = [0, 0, 0], sizes = [2, 8, 8], strides = [1, 1, 1]} : vector<2x8x32xf32> to vector<2x8x8xf32>
    "tpu.trace_start"() <{level = 10 : i32, message = "bqd,bkd->bqk"}> : () -> ()
    %cst_7 = arith.constant dense<0.000000e+00> : vector<2x8x8xf32>
    %22 = tpu.matmul %19, %20, %cst_7 {dimension_numbers = #tpu.dot_dimension_numbers<[2], [2], [1], [1], [0, 0, 0, 1, 1, 1], [0], [0]>} : vector<2x8x8xf32>, vector<2x8x8xf32>, vector<2x8x8xf32> -> vector<2x8x8xf32>
    %cst_8 = arith.constant 0xFF800000 : f32
    "tpu.trace_stop"() : () -> ()
    %23 = vector.shape_cast %18 : vector<1x8x8xi1> to vector<1x8x8xi1>
    %24 = vector.broadcast %23 : vector<1x8x8xi1> to vector<2x8x8xi1>
    %25 = vector.broadcast %cst_8 : f32 to vector<2x8x8xf32>
    %26 = arith.select %24, %22, %25 : vector<2x8x8xi1>, vector<2x8x8xf32>
    %cst_9 = arith.constant dense<0xFF800000> : vector<2x8xf32>
    %27 = vector.multi_reduction <maximumf>, %26, %cst_9 [2] : vector<2x8x8xf32> to vector<2x8xf32>
    %28 = vector.shape_cast %27 : vector<2x8xf32> to vector<2x8x1xf32>
    %29 = vector.broadcast %28 : vector<2x8x1xf32> to vector<2x8x8xf32>
    %30 = arith.subf %26, %29 : vector<2x8x8xf32>
    %31 = math.exp %30 : vector<2x8x8xf32>
    %cst_10 = arith.constant dense<0.000000e+00> : vector<2x8xf32>
    %32 = vector.multi_reduction <add>, %31, %cst_10 [2] : vector<2x8x8xf32> to vector<2x8xf32>
    %33 = vector.shape_cast %32 : vector<2x8xf32> to vector<2x8x1xf32>
    %34 = tpu.reciprocal %33 {approx = true} : vector<2x8x1xf32> -> vector<2x8x1xf32>
    %35 = vector.broadcast %34 : vector<2x8x1xf32> to vector<2x8x8xf32>
    %36 = arith.mulf %31, %35 : vector<2x8x8xf32>
    "tpu.trace_start"() <{level = 10 : i32, message = "bqk,bkd->bqd"}> : () -> ()
    %cst_11 = arith.constant dense<0.000000e+00> : vector<2x8x8xf32>
    %37 = tpu.matmul %36, %21, %cst_11 {dimension_numbers = #tpu.dot_dimension_numbers<[2], [1], [1], [2], [0, 0, 0, 1, 1, 2], [0], [0]>} : vector<2x8x8xf32>, vector<2x8x8xf32>, vector<2x8x8xf32> -> vector<2x8x8xf32>
    "tpu.trace_stop"() : () -> ()
    %38 = vector.extract_strided_slice %10 {offsets = [0, 0, 8], sizes = [2, 8, 8], strides = [1, 1, 1]} : vector<2x8x32xf32> to vector<2x8x8xf32>
    %39 = vector.extract_strided_slice %12 {offsets = [0, 0, 8], sizes = [2, 8, 8], strides = [1, 1, 1]} : vector<2x8x32xf32> to vector<2x8x8xf32>
    %40 = vector.extract_strided_slice %14 {offsets = [0, 0, 8], sizes = [2, 8, 8], strides = [1, 1, 1]} : vector<2x8x32xf32> to vector<2x8x8xf32>
    "tpu.trace_start"() <{level = 10 : i32, message = "bqd,bkd->bqk"}> : () -> ()
    %cst_12 = arith.constant dense<0.000000e+00> : vector<2x8x8xf32>
    %41 = tpu.matmul %38, %39, %cst_12 {dimension_numbers = #tpu.dot_dimension_numbers<[2], [2], [1], [1], [0, 0, 0, 1, 1, 1], [0], [0]>} : vector<2x8x8xf32>, vector<2x8x8xf32>, vector<2x8x8xf32> -> vector<2x8x8xf32>
    %cst_13 = arith.constant 0xFF800000 : f32
    "tpu.trace_stop"() : () -> ()
    %42 = vector.shape_cast %18 : vector<1x8x8xi1> to vector<1x8x8xi1>
    %43 = vector.broadcast %42 : vector<1x8x8xi1> to vector<2x8x8xi1>
    %44 = vector.broadcast %cst_13 : f32 to vector<2x8x8xf32>
    %45 = arith.select %43, %41, %44 : vector<2x8x8xi1>, vector<2x8x8xf32>
    %cst_14 = arith.constant dense<0xFF800000> : vector<2x8xf32>
    %46 = vector.multi_reduction <maximumf>, %45, %cst_14 [2] : vector<2x8x8xf32> to vector<2x8xf32>
    %47 = vector.shape_cast %46 : vector<2x8xf32> to vector<2x8x1xf32>
    %48 = vector.broadcast %47 : vector<2x8x1xf32> to vector<2x8x8xf32>
    %49 = arith.subf %45, %48 : vector<2x8x8xf32>
    %50 = math.exp %49 : vector<2x8x8xf32>
    %cst_15 = arith.constant dense<0.000000e+00> : vector<2x8xf32>
    %51 = vector.multi_reduction <add>, %50, %cst_15 [2] : vector<2x8x8xf32> to vector<2x8xf32>
    %52 = vector.shape_cast %51 : vector<2x8xf32> to vector<2x8x1xf32>
    %53 = tpu.reciprocal %52 {approx = true} : vector<2x8x1xf32> -> vector<2x8x1xf32>
    %54 = vector.broadcast %53 : vector<2x8x1xf32> to vector<2x8x8xf32>
    %55 = arith.mulf %50, %54 : vector<2x8x8xf32>
    "tpu.trace_start"() <{level = 10 : i32, message = "bqk,bkd->bqd"}> : () -> ()
    %cst_16 = arith.constant dense<0.000000e+00> : vector<2x8x8xf32>
    %56 = tpu.matmul %55, %40, %cst_16 {dimension_numbers = #tpu.dot_dimension_numbers<[2], [1], [1], [2], [0, 0, 0, 1, 1, 2], [0], [0]>} : vector<2x8x8xf32>, vector<2x8x8xf32>, vector<2x8x8xf32> -> vector<2x8x8xf32>
    "tpu.trace_stop"() : () -> ()
    %57 = vector.extract_strided_slice %10 {offsets = [0, 0, 16], sizes = [2, 8, 8], strides = [1, 1, 1]} : vector<2x8x32xf32> to vector<2x8x8xf32>
    %58 = vector.extract_strided_slice %12 {offsets = [0, 0, 16], sizes = [2, 8, 8], strides = [1, 1, 1]} : vector<2x8x32xf32> to vector<2x8x8xf32>
    %59 = vector.extract_strided_slice %14 {offsets = [0, 0, 16], sizes = [2, 8, 8], strides = [1, 1, 1]} : vector<2x8x32xf32> to vector<2x8x8xf32>
    "tpu.trace_start"() <{level = 10 : i32, message = "bqd,bkd->bqk"}> : () -> ()
    %cst_17 = arith.constant dense<0.000000e+00> : vector<2x8x8xf32>
    %60 = tpu.matmul %57, %58, %cst_17 {dimension_numbers = #tpu.dot_dimension_numbers<[2], [2], [1], [1], [0, 0, 0, 1, 1, 1], [0], [0]>} : vector<2x8x8xf32>, vector<2x8x8xf32>, vector<2x8x8xf32> -> vector<2x8x8xf32>
    %cst_18 = arith.constant 0xFF800000 : f32
    "tpu.trace_stop"() : () -> ()
    %61 = vector.shape_cast %18 : vector<1x8x8xi1> to vector<1x8x8xi1>
    %62 = vector.broadcast %61 : vector<1x8x8xi1> to vector<2x8x8xi1>
    %63 = vector.broadcast %cst_18 : f32 to vector<2x8x8xf32>
    %64 = arith.select %62, %60, %63 : vector<2x8x8xi1>, vector<2x8x8xf32>
    %cst_19 = arith.constant dense<0xFF800000> : vector<2x8xf32>
    %65 = vector.multi_reduction <maximumf>, %64, %cst_19 [2] : vector<2x8x8xf32> to vector<2x8xf32>
    %66 = vector.shape_cast %65 : vector<2x8xf32> to vector<2x8x1xf32>
    %67 = vector.broadcast %66 : vector<2x8x1xf32> to vector<2x8x8xf32>
    %68 = arith.subf %64, %67 : vector<2x8x8xf32>
    %69 = math.exp %68 : vector<2x8x8xf32>
    %cst_20 = arith.constant dense<0.000000e+00> : vector<2x8xf32>
    %70 = vector.multi_reduction <add>, %69, %cst_20 [2] : vector<2x8x8xf32> to vector<2x8xf32>
    %71 = vector.shape_cast %70 : vector<2x8xf32> to vector<2x8x1xf32>
    %72 = tpu.reciprocal %71 {approx = true} : vector<2x8x1xf32> -> vector<2x8x1xf32>
    %73 = vector.broadcast %72 : vector<2x8x1xf32> to vector<2x8x8xf32>
    %74 = arith.mulf %69, %73 : vector<2x8x8xf32>
    "tpu.trace_start"() <{level = 10 : i32, message = "bqk,bkd->bqd"}> : () -> ()
    %cst_21 = arith.constant dense<0.000000e+00> : vector<2x8x8xf32>
    %75 = tpu.matmul %74, %59, %cst_21 {dimension_numbers = #tpu.dot_dimension_numbers<[2], [1], [1], [2], [0, 0, 0, 1, 1, 2], [0], [0]>} : vector<2x8x8xf32>, vector<2x8x8xf32>, vector<2x8x8xf32> -> vector<2x8x8xf32>
    "tpu.trace_stop"() : () -> ()
    %76 = vector.extract_strided_slice %10 {offsets = [0, 0, 24], sizes = [2, 8, 8], strides = [1, 1, 1]} : vector<2x8x32xf32> to vector<2x8x8xf32>
    %77 = vector.extract_strided_slice %12 {offsets = [0, 0, 24], sizes = [2, 8, 8], strides = [1, 1, 1]} : vector<2x8x32xf32> to vector<2x8x8xf32>
    %78 = vector.extract_strided_slice %14 {offsets = [0, 0, 24], sizes = [2, 8, 8], strides = [1, 1, 1]} : vector<2x8x32xf32> to vector<2x8x8xf32>
    "tpu.trace_start"() <{level = 10 : i32, message = "bqd,bkd->bqk"}> : () -> ()
    %cst_22 = arith.constant dense<0.000000e+00> : vector<2x8x8xf32>
    %79 = tpu.matmul %76, %77, %cst_22 {dimension_numbers = #tpu.dot_dimension_numbers<[2], [2], [1], [1], [0, 0, 0, 1, 1, 1], [0], [0]>} : vector<2x8x8xf32>, vector<2x8x8xf32>, vector<2x8x8xf32> -> vector<2x8x8xf32>
    %cst_23 = arith.constant 0xFF800000 : f32
    "tpu.trace_stop"() : () -> ()
    %80 = vector.shape_cast %18 : vector<1x8x8xi1> to vector<1x8x8xi1>
    %81 = vector.broadcast %80 : vector<1x8x8xi1> to vector<2x8x8xi1>
    %82 = vector.broadcast %cst_23 : f32 to vector<2x8x8xf32>
    %83 = arith.select %81, %79, %82 : vector<2x8x8xi1>, vector<2x8x8xf32>
    %cst_24 = arith.constant dense<0xFF800000> : vector<2x8xf32>
    %84 = vector.multi_reduction <maximumf>, %83, %cst_24 [2] : vector<2x8x8xf32> to vector<2x8xf32>
    %85 = vector.shape_cast %84 : vector<2x8xf32> to vector<2x8x1xf32>
    %86 = vector.broadcast %85 : vector<2x8x1xf32> to vector<2x8x8xf32>
    %87 = arith.subf %83, %86 : vector<2x8x8xf32>
    %88 = math.exp %87 : vector<2x8x8xf32>
    %cst_25 = arith.constant dense<0.000000e+00> : vector<2x8xf32>
    %89 = vector.multi_reduction <add>, %88, %cst_25 [2] : vector<2x8x8xf32> to vector<2x8xf32>
    %90 = vector.shape_cast %89 : vector<2x8xf32> to vector<2x8x1xf32>
    %91 = tpu.reciprocal %90 {approx = true} : vector<2x8x1xf32> -> vector<2x8x1xf32>
    %92 = vector.broadcast %91 : vector<2x8x1xf32> to vector<2x8x8xf32>
    %93 = arith.mulf %88, %92 : vector<2x8x8xf32>
    "tpu.trace_start"() <{level = 10 : i32, message = "bqk,bkd->bqd"}> : () -> ()
    %cst_26 = arith.constant dense<0.000000e+00> : vector<2x8x8xf32>
    %94 = tpu.matmul %93, %78, %cst_26 {dimension_numbers = #tpu.dot_dimension_numbers<[2], [1], [1], [2], [0, 0, 0, 1, 1, 2], [0], [0]>} : vector<2x8x8xf32>, vector<2x8x8xf32>, vector<2x8x8xf32> -> vector<2x8x8xf32>
    "tpu.trace_stop"() : () -> ()
    %95 = vector.shape_cast %36 : vector<2x8x8xf32> to vector<2x1x8x8xf32>
    %96 = vector.shape_cast %55 : vector<2x8x8xf32> to vector<2x1x8x8xf32>
    %97 = vector.shape_cast %74 : vector<2x8x8xf32> to vector<2x1x8x8xf32>
    %98 = vector.shape_cast %93 : vector<2x8x8xf32> to vector<2x1x8x8xf32>
    %99 = tpu.concatenate %95, %96, %97, %98 in 1 : vector<2x1x8x8xf32>, vector<2x1x8x8xf32>, vector<2x1x8x8xf32>, vector<2x1x8x8xf32> -> vector<2x4x8x8xf32>
    %c0_27 = arith.constant 0 : index
    %c0_28 = arith.constant 0 : index
    %c0_29 = arith.constant 0 : index
    %c0_30 = arith.constant 0 : index
    %100 = vector.load %arg7[%c0_27, %c0_28, %c0_29, %c0_30] : memref<2x4x8x8xf32, #tpu.memory_space<vmem>>, vector<2x4x8x8xf32>
    tpu.vector_store %arg7[%c0_27, %c0_28, %c0_29, %c0_30], %99 {strides = array<i32>} : memref<2x4x8x8xf32, #tpu.memory_space<vmem>>, vector<2x4x8x8xf32>,
    %101 = tpu.concatenate %37, %56, %75, %94 in 2 : vector<2x8x8xf32>, vector<2x8x8xf32>, vector<2x8x8xf32>, vector<2x8x8xf32> -> vector<2x8x32xf32>
    %102 = vector.shape_cast %101 : vector<2x8x32xf32> to vector<16x32xf32>
    %c0_31 = arith.constant 0 : index
    %c0_32 = arith.constant 0 : index
    %103 = vector.load %arg4[%c0_31, %c0_32] : memref<32x32xf32, #tpu.memory_space<vmem>>, vector<32x32xf32>
    %cst_33 = arith.constant dense<0.000000e+00> : vector<16x32xf32>
    %104 = tpu.matmul %102, %103, %cst_33 {dimension_numbers = #tpu.dot_dimension_numbers<[1], [0], [0], [1], [0, 0, 1, 1], [], []>} : vector<16x32xf32>, vector<32x32xf32>, vector<16x32xf32> -> vector<16x32xf32>
    %c0_34 = arith.constant 0 : index
    %c0_35 = arith.constant 0 : index
    %105 = vector.load %arg5[%c0_34, %c0_35] : memref<1x32xf32, #tpu.memory_space<vmem>>, vector<1x32xf32>
    %106 = vector.broadcast %105 : vector<1x32xf32> to vector<16x32xf32>
    %107 = arith.addf %104, %106 : vector<16x32xf32>
    %108 = vector.shape_cast %107 : vector<16x32xf32> to vector<2x8x32xf32>
    %c0_36 = arith.constant 0 : index
    %c0_37 = arith.constant 0 : index
    %c0_38 = arith.constant 0 : index
    %109 = vector.load %arg6[%c0_36, %c0_37, %c0_38] : memref<2x8x32xf32, #tpu.memory_space<vmem>>, vector<2x8x32xf32>
    tpu.vector_store %arg6[%c0_36, %c0_37, %c0_38], %108 {strides = array<i32>} : memref<2x8x32xf32, #tpu.memory_space<vmem>>, vector<2x8x32xf32>,
    return
  }
  func.func @transform_0(%arg0: i32) -> (i32, i32, i32) {
    %c0_i32 = arith.constant 0 : i32
    %c0_i32_0 = arith.constant 0 : i32
    %c0_i32_1 = arith.constant 0 : i32
    return %arg0, %c0_i32, %c0_i32_0 : i32, i32, i32
  }
  func.func @transform_1(%arg0: i32) -> (i32, i32) {
    %c0_i32 = arith.constant 0 : i32
    %c0_i32_0 = arith.constant 0 : i32
    %c0_i32_1 = arith.constant 0 : i32
    return %c0_i32, %c0_i32_0 : i32, i32
  }
  func.func @transform_2(%arg0: i32) -> (i32, i32) {
    %c0_i32 = arith.constant 0 : i32
    %c0_i32_0 = arith.constant 0 : i32
    %c0_i32_1 = arith.constant 0 : i32
    return %c0_i32, %c0_i32_0 : i32, i32
  }
  func.func @transform_3(%arg0: i32) -> (i32, i32) {
    %c0_i32 = arith.constant 0 : i32
    %c0_i32_0 = arith.constant 0 : i32
    %c0_i32_1 = arith.constant 0 : i32
    return %c0_i32, %c0_i32_0 : i32, i32
  }
  func.func @transform_4(%arg0: i32) -> (i32, i32) {
    %c0_i32 = arith.constant 0 : i32
    %c0_i32_0 = arith.constant 0 : i32
    %c0_i32_1 = arith.constant 0 : i32
    return %c0_i32, %c0_i32_0 : i32, i32
  }
  func.func @transform_5(%arg0: i32) -> (i32, i32, i32) {
    %c0_i32 = arith.constant 0 : i32
    %c0_i32_0 = arith.constant 0 : i32
    %c0_i32_1 = arith.constant 0 : i32
    return %arg0, %c0_i32, %c0_i32_0 : i32, i32, i32
  }
  func.func @transform_6(%arg0: i32) -> (i32, i32, i32, i32) {
    %c0_i32 = arith.constant 0 : i32
    %c0_i32_0 = arith.constant 0 : i32
    %c0_i32_1 = arith.constant 0 : i32
    %c0_i32_2 = arith.constant 0 : i32
    return %arg0, %c0_i32, %c0_i32_0, %c0_i32_1 : i32, i32, i32, i32
  }
}

</mosaic_0001>

<bundles_post_ra>
// kernel: tpu_custom_call.1
= control target key start
LH: loop header
LB: loop body
LE: loop exit
PB: predicated region body
PF: predicated region fallthrough
CT: control target
= control target key end

     0   :  { %12 = vsyncpa [#allocation3], 0  ;;  %s2347_s0 = inlined_call_operand.hbm [shape: f32[2,8,32], index: 0, kind: input, shape index: {}]   ;;  %s2348_s1 = inlined_call_operand.hbm [shape: f32[32,96], index: 1, kind: input, shape index: {}]   ;;  %s2349_s2 = inlined_call_operand.vmem [shape: f32[1,96], index: 2, kind: input, shape index: {}]   ;;  %s2350_s3 = inlined_call_operand.hbm [shape: f32[32,32], index: 3, kind: input, shape index: {}]   ;;  %s2351_s4 = inlined_call_operand.vmem [shape: f32[1,32], index: 4, kind: input, shape index: {}]   ;;  %s2352_s5 = inlined_call_operand.hbm [shape: f32[2,8,32], index: 5, kind: output, shape index: {0}]   ;;  %s2353_s6 = inlined_call_operand.hbm [shape: f32[2,4,8,8], index: 6, kind: output, shape index: {1}]  }
   0x1   :  { %13 = vsyncpa [#allocation6], 0 }
   0x2   :  { %14 = vsyncpa [#allocation4], 0 }
   0x3   :  { %15 = vsyncpa [#allocation10], 0  ;;  %s2030_s21 = smov [#allocation5]   ;;  %s2031_s23 = smov [#allocation2]  }
   0x4   :  { %s33_s22 = sshll.u32 %s2030_s21, 4  ;;  %s21_s24 = sshll.u32 %s2031_s23, 4  ;;  %s34_s22 = int_to_ptr.vmem [resolvable:$true] %s33_s22  ;;  %s2087_s24 = int_to_ptr.vmem [resolvable:$true] %s21_s24 }
   0x5   :  { %s1912_s27 = scalar_lea.hbm %s2348_s1, 512 }
   0x6   :  { %p1913_p0 = scmp.ne.s32.totalorder %s2348_s1, %s1912_s27  ;;  %p1916_p1 = scmp.lt.u32.totalorder %s1912_s27, %s2348_s1 }
   0x8   :  { %p1918_p2 = pnand %p1916_p1, %p1913_p0 }
   0xa   :  { %1921 = shalt.err (!%p1918_p2)
}
   0xb   :  { %s1922_s8 = scalar_lea.vmem %s34_s22, 512  ;;  %p1927_p4 = scmp.lt.s32.totalorder %s34_s22, %s34_s22 }
   0xc   :  { %p1923_p3 = scmp.ne.s32.totalorder %s34_s22, %s1922_s8  ;;  %p1928_p5 = scmp.lt.s32.totalorder %s1922_s8, %s1922_s8 }
   0xe   :  { %p1929_p6 = por %p1928_p5, %p1927_p4 }
  0x10   :  { %p1930_p7 = pnand %p1929_p6, %p1923_p3 }
  0x12   :  { %1933 = shalt.err (!%p1930_p7)
}
  0x13   :  { %s2032_s9 = smov 128   ;;  %s2033_s10 = smov 8  }
  0x14   :  { %39 = dma.hbm_to_vmem [thread:$0]  %s2348_s1, 512, %s34_s22, [#allocation6], %s2032_s9, %s2032_s9, %s2033_s10  }
  0x15   :  { %s1934_s15 = scalar_lea.hbm %s2347_s0, 256 }
  0x16   :  { %p1935_p8 = scmp.ne.s32.totalorder %s2347_s0, %s1934_s15  ;;  %p1938_p9 = scmp.lt.u32.totalorder %s1934_s15, %s2347_s0 }
  0x18   :  { %p1940_p10 = pnand %p1938_p9, %p1935_p8 }
  0x1a   :  { %1943 = shalt.err (!%p1940_p10)
}
  0x1b   :  { %s1944_s20 = scalar_lea.vmem %s2087_s24, 256  ;;  %p1949_p12 = scmp.lt.s32.totalorder %s2087_s24, %s2087_s24 }
  0x1c   :  { %p1945_p11 = scmp.ne.s32.totalorder %s2087_s24, %s1944_s20  ;;  %p1950_p13 = scmp.lt.s32.totalorder %s1944_s20, %s1944_s20 }
  0x1e   :  { %p1951_p0 = por %p1950_p13, %p1949_p12 }
  0x20   :  { %p1952_p1 = pnand %p1951_p0, %p1945_p11 }
  0x22   :  { %1955 = shalt.err (!%p1952_p1)
}
  0x23   :  { %27 = dma.hbm_to_vmem [thread:$0]  %s2347_s0, 256, %s2087_s24, [#allocation3], %s2032_s9, %s2032_s9, %s2033_s10  }
  0x24   :  { %s2034_s22 = smov [#allocation7]   ;;  %s1956_s27 = scalar_lea.hbm %s2350_s3, 512 }
  0x25   :  { %s47_s23 = sshll.u32 %s2034_s22, 4  ;;  %p1957_p2 = scmp.ne.s32.totalorder %s2350_s3, %s1956_s27  ;;  %s48_s23 = int_to_ptr.vmem [resolvable:$true] %s47_s23 }
  0x26   :  { %p1960_p3 = scmp.lt.u32.totalorder %s1956_s27, %s2350_s3 }
  0x28   :  { %p1962_p4 = pnand %p1960_p3, %p1957_p2 }
  0x2a   :  { %1965 = shalt.err (!%p1962_p4)
}
  0x2b   :  { %s1966_s8 = scalar_lea.vmem %s48_s23, 512  ;;  %p1971_p6 = scmp.lt.s32.totalorder %s48_s23, %s48_s23 }
  0x2c   :  { %p1967_p5 = scmp.ne.s32.totalorder %s48_s23, %s1966_s8  ;;  %p1972_p7 = scmp.lt.s32.totalorder %s1966_s8, %s1966_s8 }
  0x2e   :  { %p1973_p8 = por %p1972_p7, %p1971_p6 }
  0x30   :  { %p1974_p9 = pnand %p1973_p8, %p1967_p5 }
  0x32   :  { %1977 = shalt.err (!%p1974_p9)
}
  0x33   :  { %53 = dma.hbm_to_vmem [thread:$0]  %s2350_s3, 512, %s48_s23, [#allocation6], %s2032_s9, %s2032_s9, %s2033_s10  }
  0x34   :  { %2022 = dma.done.wait [#allocation3], 256  }
  0x35   :  { %2023 = vsyncadd [#allocation3], 4294967040 }
  0x36   :  { %2024 = dma.done.wait [#allocation6], 1024  }
  0x37   :  { %2025 = vsyncadd [#allocation6], 4294966272  ;;  %vm78_vm0 = vcmask 261120   ;;  %v67_v0 = vld [vmem:[#allocation5] sm:$0xff]  ;;  %v68_v1 = vld [vmem:[#allocation5 + $0x8] sm:$0xff]  ;;  %v2035_v8 = vmov 0.0   ;;  %v162_v18 = vlaneseq }
  0x38   :  { %v69_v2 = vld [vmem:[#allocation5 + $0x10] sm:$0xff]  ;;  %v1842_v3 = vpack.c.bf16 %v68_v1, %v67_v0  ;;  %v70_v4 = vld [vmem:[#allocation5 + $0x18] sm:$0xff]  ;;  %1751 = vmatprep.subr.mxu1 %v2035_v8  ;;  %vm2036_vm1 = vmmov 0   ;;  %s2037_s12 = smov 96   ;;  %vm170_vm2 = vcmask 64512   ;;  %s2039_s13 = smov 88  }
  0x39   :  { %v65_v5 = vld [vmem:[#allocation2] sm:$0xff]  ;;  %v1846_v6 = vpack.c.bf16 %v70_v4, %v69_v2  ;;  %v66_v7 = vld [vmem:[#allocation2 + $0x8] sm:$0xff]  ;;  %1753 = vmatprep.mubr.msk.f32.mxu1 %vm2036_vm1, %v2035_v8  ;;  %v163_v19 = vshrl.u32 %v162_v18, 7  ;;  %v165_v20 = vand.u32 127, %v162_v18  ;;  %s2040_s14 = smov 120   ;;  %s2041_s15 = smov 56  }
  0x3a   :  { %1748 = vmatprep.mubr.msk.f32.mxu0 %vm78_vm0, %v65_v5  ;;  %1843 = vmatprep.subr.bf16.mxu0 %v1842_v3  ;;  %v1666_v9 = vld [vmem:[%s2349_s2] ss:$0 sm:$0xff]  ;;  %s2038_s2 = smov 64   ;;  %s2042_s16 = smov 112   ;;  %vm1535_vm4 = vcmask 195584   ;;  %vm1532_vm5 = vcmask 130048  }
  0x3b   :  { %1845 = vmatpush3.bf16.msra.mxu0 %v1842_v3  ;;  %vm2174_vm3 = vcmp.le.s32.totalorder %v165_v20, %v163_v19  ;;  %s2043_s17 = smov 80   ;;  %s2044_s18 = smov 48  }
  0x3c   :  { %1847 = vmatprep.subr.bf16.mxu0 %v1846_v6  ;;  %s2045_s19 = smov 72   ;;  %s2046_s20 = smov 104  }
  0x3d   :  { %s2047_s1 = smov 40   ;;  %s2048_s21 = smov 16  }
  0x3e   :  { %s2049_s22 = smov 24   ;;  %s2050_s23 = smov [#allocation9]  }
  0x3f   :  { %1849 = vmatpush3.bf16.msra.mxu0 %v1846_v6  ;;  %s1649_s25 = sshll.u32 %s2050_s23, 4  ;;  %s1650_s25 = int_to_ptr.vmem [resolvable:$true] %s1649_s25 }
  0x40   :  { %1771 = vmatprep.subr.mxu0 %v2035_v8  ;;  %s1978_s26 = scalar_lea.vmem %s1650_s25, 1024  ;;  %p1983_p11 = scmp.lt.s32.totalorder %s1650_s25, %s1650_s25 }
  0x41   :  { %p1979_p10 = scmp.ne.s32.totalorder %s1650_s25, %s1978_s26  ;;  %p1984_p12 = scmp.lt.s32.totalorder %s1978_s26, %s1978_s26 }
  0x42   :  { %1749 = vmatmul.mubr.msk.f32.vlgmr.msra.gmra.mrb[0].mxu0 %vm78_vm0, %v66_v7 }
  0x43   :  { %1773 = vmatprep.mubr.msk.f32.mxu0 %vm2036_vm1, %v2035_v8  ;;  %p1985_p13 = por %p1984_p12, %p1983_p11 }
  0x45   :  { %p1986_p0 = pnand %p1985_p13, %p1979_p10 }
 0x115   :  { %v1750_v10 = vpop.f32.mrb[0].mxu0 }
 0x116   :  { %v151_v11 = vpop.f32.mrb[1].mxu0  ;;  %v2153_v13 = vadd.f32 %v1750_v10, %v1666_v9 }
 0x117   :  { %v2150_v12 = vadd.f32 %v1666_v9, %v151_v11 }
 0x118   :  { %v2167_v17 = vmul.f32 0.35355338, %v2153_v13 }
 0x119   :  { %168 = vrot.lane.b32.xlu0 %v2150_v12, %s2037_s12  ;;  %v2159_v15 = vmul.f32 0.35355338, %v2150_v12 }
 0x11d   :  { %247 = vrot.lane.b32.xlu0 %v2153_v13, %s2037_s12 }
 0x18b   :  { %v169_v14 = vpop.permute.xlu0 %168 }
 0x18c   :  { %1752 = vmatpush3.xpose.msk.msra.mxu1 %vm170_vm2, %v169_v14 }
 0x18d   :  { %1756 = vmatprep.subr.mxu1 %v2035_v8 }
 0x18f   :  { %v248_v16 = vpop.permute.xlu0 %247  ;;  %1754 = vmatmul.mubr.msk.f32.vlgmr.msra.gmra.mrb[0].mxu1 %vm170_vm2, %v2159_v15 }
 0x190   :  { %1757 = vmatpush3.xpose.msk.msra.mxu1 %vm170_vm2, %v248_v16  ;;  %1758 = vmatprep.mubr.msk.f32.mxu1 %vm2036_vm1, %v2035_v8 }
 0x191   :  { %1761 = vmatprep.subr.mxu1 %v2035_v8 }
 0x193   :  { %1759 = vmatmul.mubr.msk.f32.vlgmr.msra.gmra.mrb[2].mxu1 %vm170_vm2, %v2167_v17 }
 0x194   :  { %1763 = vmatprep.mubr.msk.f32.mxu1 %vm2036_vm1, %v2035_v8 }
 0x262   :  { %v242_v22 = vpop.f32.mrb[0].mxu1 }
 0x263   :  { %v326_v23 = vsel %vm2174_vm3, %v242_v22, -inf  ;;  %v1755_v24 = vpop.f32.mrb[1].mxu1 }
 0x264   :  { %v328_v25 = vsel %vm170_vm2, %v326_v23, -inf }
 0x265   :  { %329 = vmax.xlane.f32.xlu1 %v328_v25 }
 0x266   :  { %v320_v26 = vpop.f32.mrb[2].mxu1 }
 0x267   :  { %v327_v27 = vsel %vm2174_vm3, %v320_v26, -inf  ;;  %v1760_v28 = vpop.f32.mrb[3].mxu1 }
 0x268   :  { %v331_v29 = vsel %vm170_vm2, %v327_v27, -inf }
 0x269   :  { %332 = vmax.xlane.f32.xlu1 %v331_v29 }
 0x27a   :  { %350 = vrot.lane.b32.xlu1 %v2150_v12, %s2038_s2 }
 0x27e   :  { %426 = vrot.lane.b32.xlu1 %v2153_v13, %s2038_s2 }
 0x282   :  { %504 = vrot.lane.b32.xlu1 %v2150_v12, %s2039_s13 }
 0x286   :  { %582 = vrot.lane.b32.xlu1 %v2153_v13, %s2039_s13 }
 0x2f2   :  { %v330_v30 = vpop.xlane.xlu1 %329 }
 0x2f3   :  { %v334_v31 = vsub.f32 %v326_v23, %v330_v30 }
 0x2f5   :  { %v336_v32 = vmul.f32 1.442695, %v334_v31 }
 0x2f6   :  { %v333_v33 = vpop.xlane.xlu1 %332 }
 0x2f7   :  { %1880 = vpow2.f32 %v336_v32  ;;  %v335_v34 = vsub.f32 %v327_v27, %v333_v33 }
 0x2f9   :  { %v338_v35 = vmul.f32 1.442695, %v335_v34 }
 0x2fa   :  { %v351_v36 = vpop.permute.xlu1 %350 }
 0x2fb   :  { %1882 = vpow2.f32 %v338_v35  ;;  %1762 = vmatpush3.msra.mxu1 %v351_v36 }
 0x2fc   :  { %1766 = vmatprep.subr.mxu1 %v2035_v8 }
 0x2fe   :  { %v427_v37 = vpop.permute.xlu1 %426 }
 0x301   :  { %v1881_v38 = vpop.eup %1880 }
 0x302   :  { %v505_v39 = vpop.permute.xlu1 %504  ;;  %v340_v40 = vsel %vm170_vm2, %v1881_v38, 0.0 }
 0x303   :  { %341 = vadd.xlane.f32.xlu0 %v340_v40  ;;  %1772 = vmatpush3.xpose.msk.msra.mxu0 %vm170_vm2, %v505_v39 }
 0x304   :  { %1781 = vmatprep.subr.mxu0 %v2035_v8 }
 0x305   :  { %v1883_v41 = vpop.eup %1882 }
 0x306   :  { %v343_v42 = vsel %vm170_vm2, %v1883_v41, 0.0  ;;  %v583_v43 = vpop.permute.xlu1 %582 }
 0x307   :  { %344 = vadd.xlane.f32.xlu1 %v343_v42 }
 0x318   :  { %580 = vrot.lane.b32.xlu1 %v2167_v17, %s2040_s14 }
 0x319   :  { %502 = vrot.lane.b32.xlu0 %v2159_v15, %s2040_s14 }
 0x390   :  { %v342_v44 = vpop.xlane.xlu0 %341 }
 0x391   :  { %1884 = vrcp.f32 %v342_v44 }
 0x394   :  { %v503_v45 = vpop.permute.xlu0 %502  ;;  %v345_v46 = vpop.xlane.xlu1 %344 }
 0x395   :  { %1886 = vrcp.f32 %v345_v46  ;;  %1774 = vmatmul.mubr.msk.f32.vlgmr.msra.gmra.mrb[2].mxu0 %vm170_vm2, %v503_v45 }
 0x396   :  { %1783 = vmatprep.mubr.msk.f32.mxu0 %vm2036_vm1, %v2035_v8 }
 0x398   :  { %v581_v51 = vpop.permute.xlu1 %580 }
 0x39b   :  { %v1885_v47 = vpop.eup %1884 }
 0x39c   :  { %v348_v48 = vmul.f32 %v1885_v47, %v1881_v38 }
 0x39e   :  { %1498 = vst.msk [vmem:[#allocation9] sm:$0xff] %vm170_vm2, %v348_v48  ;;  %1764 = vmatmul.mubr.msk.f32.vlgmr.msra.gmra.mrb[4].mxu1 %vm170_vm2, %v348_v48 }
 0x39f   :  { %v1887_v49 = vpop.eup %1886  ;;  %1767 = vmatpush3.msra.mxu1 %v427_v37  ;;  %1768 = vmatprep.mubr.msk.f32.mxu1 %vm2036_vm1, %v2035_v8 }
 0x3a0   :  { %v349_v50 = vmul.f32 %v1887_v49, %v1883_v41  ;;  %1776 = vmatprep.subr.mxu1 %v2035_v8 }
 0x3a2   :  { %1502 = vst.msk [vmem:[#allocation9 + $0x20] sm:$0xff] %vm170_vm2, %v349_v50  ;;  %1769 = vmatmul.mubr.msk.f32.vlgmr.msra.gmra.mrb[6].mxu1 %vm170_vm2, %v349_v50 }
 0x3a3   :  { %1778 = vmatprep.mubr.msk.f32.mxu1 %vm2036_vm1, %v2035_v8 }
 0x3a6   :  { %1777 = vmatpush3.xpose.msk.msra.mxu1 %vm170_vm2, %v583_v43 }
 0x3a7   :  { %1786 = vmatprep.subr.mxu1 %v2035_v8 }
 0x3a9   :  { %1779 = vmatmul.mubr.msk.f32.vlgmr.msra.gmra.mrb[8].mxu1 %vm170_vm2, %v581_v51 }
 0x3aa   :  { %1788 = vmatprep.mubr.msk.f32.mxu1 %vm2036_vm1, %v2035_v8 }
 0x468   :  { %v576_v52 = vpop.f32.mrb[2].mxu0 }
 0x469   :  { %v658_v53 = vsel %vm2174_vm3, %v576_v52, -inf  ;;  %v1775_v54 = vpop.f32.mrb[3].mxu0 }
 0x46a   :  { %v660_v55 = vsel %vm170_vm2, %v658_v53, -inf }
 0x46b   :  { %661 = vmax.xlane.f32.xlu1 %v660_v55 }
 0x471   :  { %v2215_v56 = vpop.f32.mrb[4].mxu1 }
 0x472   :  { %v1765_v57 = vpop.f32.mrb[5].mxu1 }
 0x475   :  { %v2217_v58 = vpop.f32.mrb[6].mxu1 }
 0x476   :  { %v1770_v59 = vpop.f32.mrb[7].mxu1 }
 0x47c   :  { %v654_v60 = vpop.f32.mrb[8].mxu1 }
 0x47d   :  { %v659_v61 = vsel %vm2174_vm3, %v654_v60, -inf  ;;  %v1780_v62 = vpop.f32.mrb[9].mxu1 }
 0x47e   :  { %v663_v63 = vsel %vm170_vm2, %v659_v61, -inf }
 0x47f   :  { %664 = vmax.xlane.f32.xlu0 %v663_v63 }
 0x495   :  { %758 = vrot.lane.b32.xlu0 %v2153_v13, %s2041_s15 }
 0x499   :  { %834 = vrot.lane.b32.xlu0 %v2159_v15, %s2042_s16 }
 0x4f8   :  { %v662_v0 = vpop.xlane.xlu1 %661 }
 0x4f9   :  { %v666_v1 = vsub.f32 %v658_v53, %v662_v0 }
 0x4fb   :  { %v668_v2 = vmul.f32 1.442695, %v666_v1 }
 0x4fd   :  { %1888 = vpow2.f32 %v668_v2 }
 0x507   :  { %v1889_v3 = vpop.eup %1888 }
 0x508   :  { %v672_v4 = vsel %vm170_vm2, %v1889_v3, 0.0 }
 0x509   :  { %673 = vadd.xlane.f32.xlu1 %v672_v4 }
 0x50c   :  { %v665_v5 = vpop.xlane.xlu0 %664 }
 0x50d   :  { %v667_v7 = vsub.f32 %v659_v61, %v665_v5 }
 0x50f   :  { %v670_v9 = vmul.f32 1.442695, %v667_v7 }
 0x510   :  { %v759_v6 = vpop.permute.xlu0 %758 }
 0x511   :  { %1787 = vmatpush3.msra.mxu1 %v759_v6  ;;  %1890 = vpow2.f32 %v670_v9 }
 0x512   :  { %1796 = vmatprep.subr.mxu1 %v2035_v8 }
 0x514   :  { %v835_v22 = vpop.permute.xlu0 %834 }
 0x51a   :  { %682 = vrot.lane.b32.xlu1 %v2150_v12, %s2041_s15 }
 0x51b   :  { %v1891_v10 = vpop.eup %1890 }
 0x51c   :  { %v675_v11 = vsel %vm170_vm2, %v1891_v10, 0.0 }
 0x51e   :  { %836 = vrot.lane.b32.xlu1 %v2150_v12, %s2043_s17 }
 0x522   :  { %914 = vrot.lane.b32.xlu1 %v2153_v13, %s2043_s17 }
 0x546   :  { %676 = vadd.xlane.f32.xlu1 %v675_v11 }
 0x557   :  { %912 = vrot.lane.b32.xlu1 %v2167_v17, %s2042_s16 }
 0x596   :  { %v674_v14 = vpop.xlane.xlu1 %673 }
 0x597   :  { %1892 = vrcp.f32 %v674_v14 }
 0x59a   :  { %v683_v16 = vpop.permute.xlu1 %682 }
 0x59b   :  { %1782 = vmatpush3.msra.mxu0 %v683_v16 }
 0x59c   :  { %1791 = vmatprep.subr.mxu0 %v2035_v8 }
 0x59e   :  { %v837_v20 = vpop.permute.xlu1 %836 }
 0x5a1   :  { %v1893_v18 = vpop.eup %1892 }
 0x5a2   :  { %v680_v19 = vmul.f32 %v1893_v18, %v1889_v3  ;;  %v915_v23 = vpop.permute.xlu1 %914 }
 0x5a4   :  { %1499 = vst.msk [vmem:[#allocation9 + $0x8] sm:$0xff] %vm170_vm2, %v680_v19  ;;  %1784 = vmatmul.mubr.msk.f32.vlgmr.msra.gmra.mrb[4].mxu0 %vm170_vm2, %v680_v19 }
 0x5a5   :  { %1792 = vmatpush3.xpose.msk.msra.mxu0 %vm170_vm2, %v837_v20  ;;  %1793 = vmatprep.mubr.msk.f32.mxu0 %vm2036_vm1, %v2035_v8 }
 0x5a6   :  { %1801 = vmatprep.subr.mxu0 %v2035_v8 }
 0x5a8   :  { %1794 = vmatmul.mubr.msk.f32.vlgmr.msra.gmra.mrb[6].mxu0 %vm170_vm2, %v835_v22 }
 0x5a9   :  { %1803 = vmatprep.mubr.msk.f32.mxu0 %vm2036_vm1, %v2035_v8 }
 0x5d3   :  { %v677_v24 = vpop.xlane.xlu1 %676 }
 0x5d4   :  { %1894 = vrcp.f32 %v677_v24 }
 0x5d7   :  { %v913_v27 = vpop.permute.xlu1 %912 }
 0x5de   :  { %v1895_v25 = vpop.eup %1894 }
 0x5df   :  { %v681_v26 = vmul.f32 %v1895_v25, %v1891_v10 }
 0x5e1   :  { %1503 = vst.msk [vmem:[#allocation9 + $0x28] sm:$0xff] %vm170_vm2, %v681_v26  ;;  %1789 = vmatmul.mubr.msk.f32.vlgmr.msra.gmra.mrb[10].mxu1 %vm170_vm2, %v681_v26 }
 0x5e2   :  { %1797 = vmatpush3.xpose.msk.msra.mxu1 %vm170_vm2, %v915_v23  ;;  %1798 = vmatprep.mubr.msk.f32.mxu1 %vm2036_vm1, %v2035_v8 }
 0x5e3   :  { %1806 = vmatprep.subr.mxu1 %v2035_v8 }
 0x5e5   :  { %1799 = vmatmul.mubr.msk.f32.vlgmr.msra.gmra.mrb[12].mxu1 %vm170_vm2, %v913_v27 }
 0x5e6   :  { %1808 = vmatprep.mubr.msk.f32.mxu1 %vm2036_vm1, %v2035_v8 }
 0x677   :  { %v2250_v28 = vpop.f32.mrb[4].mxu0 }
 0x678   :  { %v1785_v29 = vpop.f32.mrb[5].mxu0 }
 0x67b   :  { %v908_v30 = vpop.f32.mrb[6].mxu0 }
 0x67c   :  { %v990_v31 = vsel %vm2174_vm3, %v908_v30, -inf  ;;  %v1795_v32 = vpop.f32.mrb[7].mxu0 }
 0x67d   :  { %v992_v33 = vsel %vm170_vm2, %v990_v31, -inf  ;;  %v1540_v32 = vld [vmem:[#allocation7 + $0x10] sm:$0xff] }
 0x67e   :  { %993 = vmax.xlane.f32.xlu0 %v992_v33 }
 0x6b4   :  { %v2255_v34 = vpop.f32.mrb[10].mxu1 }
 0x6b5   :  { %v1790_v35 = vpop.f32.mrb[11].mxu1 }
 0x6b8   :  { %v986_v36 = vpop.f32.mrb[12].mxu1 }
 0x6b9   :  { %v991_v37 = vsel %vm2174_vm3, %v986_v36, -inf  ;;  %v1800_v38 = vpop.f32.mrb[13].mxu1 }
 0x6ba   :  { %v995_v39 = vsel %vm170_vm2, %v991_v37, -inf }
 0x6bb   :  { %996 = vmax.xlane.f32.xlu1 %v995_v39 }
 0x6cc   :  { %1014 = vrot.lane.b32.xlu1 %v2150_v12, %s2044_s18 }
 0x6d0   :  { %1168 = vrot.lane.b32.xlu1 %v2150_v12, %s2045_s19 }
 0x6d4   :  { %1246 = vrot.lane.b32.xlu1 %v2153_v13, %s2045_s19 }
 0x6d8   :  { %1244 = vrot.lane.b32.xlu1 %v2167_v17, %s2046_s20 }
 0x70b   :  { %v994_v40 = vpop.xlane.xlu0 %993 }
 0x70c   :  { %v998_v41 = vsub.f32 %v990_v31, %v994_v40  ;;  %v1539_v31 = vld [vmem:[#allocation7 + $0x8] sm:$0xff] }
 0x70e   :  { %v1000_v42 = vmul.f32 1.442695, %v998_v41 }
 0x710   :  { %1896 = vpow2.f32 %v1000_v42 }
 0x71a   :  { %v1897_v43 = vpop.eup %1896 }
 0x71b   :  { %v1004_v44 = vsel %vm170_vm2, %v1897_v43, 0.0 }
 0x71c   :  { %1005 = vadd.xlane.f32.xlu0 %v1004_v44 }
 0x732   :  { %1090 = vrot.lane.b32.xlu0 %v2153_v13, %s2044_s18 }
 0x748   :  { %v997_v45 = vpop.xlane.xlu1 %996 }
 0x749   :  { %v999_v46 = vsub.f32 %v991_v37, %v997_v45 }
 0x74b   :  { %v1002_v47 = vmul.f32 1.442695, %v999_v46 }
 0x74c   :  { %v1015_v48 = vpop.permute.xlu1 %1014 }
 0x74d   :  { %1898 = vpow2.f32 %v1002_v47  ;;  %1802 = vmatpush3.msra.mxu0 %v1015_v48 }
 0x74e   :  { %1811 = vmatprep.subr.mxu0 %v2035_v8 }
 0x750   :  { %v1169_v54 = vpop.permute.xlu1 %1168 }
 0x754   :  { %v1247_v59 = vpop.permute.xlu1 %1246 }
 0x757   :  { %v1899_v49 = vpop.eup %1898 }
 0x758   :  { %v1007_v17 = vsel %vm170_vm2, %v1899_v49, 0.0  ;;  %v1245_v61 = vpop.permute.xlu1 %1244 }
 0x759   :  { %1008 = vadd.xlane.f32.xlu0 %v1007_v17 }
 0x76f   :  { %1166 = vrot.lane.b32.xlu0 %v2159_v15, %s2046_s20 }
 0x7a9   :  { %v1006_v50 = vpop.xlane.xlu0 %1005 }
 0x7aa   :  { %1900 = vrcp.f32 %v1006_v50 }
 0x7ad   :  { %v1091_v51 = vpop.permute.xlu0 %1090 }
 0x7ae   :  { %1807 = vmatpush3.msra.mxu1 %v1091_v51 }
 0x7af   :  { %1816 = vmatprep.subr.mxu1 %v2035_v8 }
 0x7b4   :  { %v1901_v52 = vpop.eup %1900 }
 0x7b5   :  { %v1012_v53 = vmul.f32 %v1901_v52, %v1897_v43 }
 0x7b7   :  { %1500 = vst.msk [vmem:[#allocation9 + $0x10] sm:$0xff] %vm170_vm2, %v1012_v53  ;;  %1804 = vmatmul.mubr.msk.f32.vlgmr.msra.gmra.mrb[8].mxu0 %vm170_vm2, %v1012_v53 }
 0x7b8   :  { %1812 = vmatpush3.xpose.msk.msra.mxu0 %vm170_vm2, %v1169_v54  ;;  %1813 = vmatprep.mubr.msk.f32.mxu0 %vm2036_vm1, %v2035_v8 }
 0x7b9   :  { %1821 = vmatprep.subr.mxu0 %v2035_v8 }
 0x7e6   :  { %v1009_v15 = vpop.xlane.xlu0 %1008 }
 0x7e7   :  { %1902 = vrcp.f32 %v1009_v15 }
 0x7ea   :  { %v1167_v55 = vpop.permute.xlu0 %1166 }
 0x7eb   :  { %1814 = vmatmul.mubr.msk.f32.vlgmr.msra.gmra.mrb[10].mxu0 %vm170_vm2, %v1167_v55 }
 0x7ec   :  { %1823 = vmatprep.mubr.msk.f32.mxu0 %vm2036_vm1, %v2035_v8 }
 0x7f1   :  { %v1903_v57 = vpop.eup %1902 }
 0x7f2   :  { %v1013_v60 = vmul.f32 %v1903_v57, %v1899_v49 }
 0x7f4   :  { %1504 = vst.msk [vmem:[#allocation9 + $0x30] sm:$0xff] %vm170_vm2, %v1013_v60  ;;  %1809 = vmatmul.mubr.msk.f32.vlgmr.msra.gmra.mrb[14].mxu1 %vm170_vm2, %v1013_v60 }
 0x7f5   :  { %1817 = vmatpush3.xpose.msk.msra.mxu1 %vm170_vm2, %v1247_v59  ;;  %1818 = vmatprep.mubr.msk.f32.mxu1 %vm2036_vm1, %v2035_v8 }
 0x7f6   :  { %1826 = vmatprep.subr.mxu1 %v2035_v8 }
 0x7f8   :  { %1819 = vmatmul.mubr.msk.f32.vlgmr.msra.gmra.mrb[16].mxu1 %vm170_vm2, %v1245_v61 }
 0x7f9   :  { %1828 = vmatprep.mubr.msk.f32.mxu1 %vm2036_vm1, %v2035_v8 }
 0x88a   :  { %v1086_v62 = vpop.f32.mrb[8].mxu0 }
 0x88b   :  { %v1805_v63 = vpop.f32.mrb[9].mxu0 }
 0x8be   :  { %v1240_v0 = vpop.f32.mrb[10].mxu0 }
 0x8bf   :  { %v1322_v1 = vsel %vm2174_vm3, %v1240_v0, -inf  ;;  %v1815_v2 = vpop.f32.mrb[11].mxu0 }
 0x8c0   :  { %v1324_v3 = vsel %vm170_vm2, %v1322_v1, -inf }
 0x8c1   :  { %1325 = vmax.xlane.f32.xlu0 %v1324_v3 }
 0x8c7   :  { %v1162_v4 = vpop.f32.mrb[14].mxu1 }
 0x8c8   :  { %v1810_v5 = vpop.f32.mrb[15].mxu1 }
 0x8cb   :  { %v1318_v6 = vpop.f32.mrb[16].mxu1 }
 0x8cc   :  { %v1323_v7 = vsel %vm2174_vm3, %v1318_v6, -inf  ;;  %v1820_v9 = vpop.f32.mrb[17].mxu1 }
 0x8cd   :  { %v1327_v10 = vsel %vm170_vm2, %v1323_v7, -inf }
 0x8ce   :  { %1328 = vmax.xlane.f32.xlu1 %v1327_v10 }
 0x8df   :  { %1346 = vrot.lane.b32.xlu1 %v2150_v12, %s2047_s1 }
 0x8e3   :  { %1508 = vrot.lane.b32.xlu1 %v2250_v28, %s2033_s10 }
 0x8e7   :  { %1510 = vrot.lane.b32.xlu1 %v2255_v34, %s2033_s10  ;;  %v1541_v34 = vld [vmem:[#allocation7 + $0x18] sm:$0xff] }
 0x8e8   :  { %v1854_v35 = vpack.c.bf16 %v1541_v34, %v1540_v32 }
 0x8eb   :  { %1518 = vrot.lane.b32.xlu1 %v1162_v4, %s2048_s21 }
 0x94e   :  { %v1326_v8 = vpop.xlane.xlu0 %1325 }
 0x94f   :  { %v1330_v11 = vsub.f32 %v1322_v1, %v1326_v8 }
 0x951   :  { %v1332_v14 = vmul.f32 1.442695, %v1330_v11 }
 0x953   :  { %1904 = vpow2.f32 %v1332_v14 }
 0x95b   :  { %v1329_v21 = vpop.xlane.xlu1 %1328 }
 0x95c   :  { %v1331_v16 = vsub.f32 %v1323_v7, %v1329_v21 }
 0x95d   :  { %v1905_v18 = vpop.eup %1904 }
 0x95e   :  { %v1334_v19 = vmul.f32 1.442695, %v1331_v16  ;;  %v1336_v20 = vsel %vm170_vm2, %v1905_v18, 0.0 }
 0x95f   :  { %1337 = vadd.xlane.f32.xlu0 %v1336_v20  ;;  %v1347_v12 = vpop.permute.xlu1 %1346 }
 0x960   :  { %1906 = vpow2.f32 %v1334_v19  ;;  %1822 = vmatpush3.msra.mxu0 %v1347_v12 }
 0x963   :  { %v1509_v40 = vpop.permute.xlu1 %1508 }
 0x964   :  { %v1530_v42 = vsel %vm170_vm2, %v2215_v56, %v1509_v40 }
 0x967   :  { %v1511_v46 = vpop.permute.xlu1 %1510 }
 0x968   :  { %v1531_v48 = vsel %vm170_vm2, %v2217_v58, %v1511_v46 }
 0x96a   :  { %v1907_v22 = vpop.eup %1906 }
 0x96b   :  { %v1339_v23 = vsel %vm170_vm2, %v1907_v22, 0.0  ;;  %v1519_v47 = vpop.permute.xlu1 %1518 }
 0x96c   :  { %1340 = vadd.xlane.f32.xlu0 %v1339_v23  ;;  %v1534_v49 = vsel %vm1532_vm5, %v1531_v48, %v1519_v47 }
 0x982   :  { %1422 = vrot.lane.b32.xlu0 %v2153_v13, %s2047_s1  ;;  %v1538_v13 = vld [vmem:[#allocation7] sm:$0xff] }
 0x983   :  { %v1850_v33 = vpack.c.bf16 %v1539_v31, %v1538_v13 }
 0x985   :  { %1851 = vmatprep.subr.bf16.mxu0 %v1850_v33 }
 0x986   :  { %1516 = vrot.lane.b32.xlu0 %v1086_v62, %s2048_s21 }
 0x9ec   :  { %v1338_v24 = vpop.xlane.xlu0 %1337 }
 0x9ed   :  { %1908 = vrcp.f32 %v1338_v24 }
 0x9f7   :  { %v1909_v25 = vpop.eup %1908 }
 0x9f8   :  { %v1344_v26 = vmul.f32 %v1909_v25, %v1905_v18 }
 0x9f9   :  { %v1341_v27 = vpop.xlane.xlu0 %1340 }
 0x9fa   :  { %1501 = vst.msk [vmem:[#allocation9 + $0x18] sm:$0xff] %vm170_vm2, %v1344_v26  ;;  %1910 = vrcp.f32 %v1341_v27  ;;  %1824 = vmatmul.mubr.msk.f32.vlgmr.msra.gmra.mrb[12].mxu0 %vm170_vm2, %v1344_v26 }
 0x9fb   :  { %1853 = vmatpush3.bf16.msra.mxu0 %v1850_v33 }
 0x9fc   :  { %1855 = vmatprep.subr.bf16.mxu0 %v1854_v35 }
 0x9fd   :  { %v1423_v28 = vpop.permute.xlu0 %1422 }
 0x9fe   :  { %1827 = vmatpush3.msra.mxu1 %v1423_v28 }
 0x9ff   :  { %1857 = vmatpush3.bf16.msra.mxu0 %v1854_v35 }
 0xa01   :  { %v1517_v41 = vpop.permute.xlu0 %1516 }
 0xa02   :  { %v1533_v43 = vsel %vm1532_vm5, %v1530_v42, %v1517_v41 }
 0xa04   :  { %v1911_v29 = vpop.eup %1910 }
 0xa05   :  { %v1345_v30 = vmul.f32 %v1911_v29, %v1907_v22 }
 0xa07   :  { %1505 = vst.msk [vmem:[#allocation9 + $0x38] sm:$0xff] %vm170_vm2, %v1345_v30  ;;  %1829 = vmatmul.mubr.msk.f32.vlgmr.msra.gmra.mrb[18].mxu1 %vm170_vm2, %v1345_v30 }
 0xacd   :  { %v1418_v36 = vpop.f32.mrb[12].mxu0 }
 0xace   :  { %1524 = vrot.lane.b32.xlu0 %v1418_v36, %s2049_s22  ;;  %v1825_v37 = vpop.f32.mrb[13].mxu0 }
 0xada   :  { %v1494_v38 = vpop.f32.mrb[18].mxu1 }
 0xadb   :  { %1526 = vrot.lane.b32.xlu1 %v1494_v38, %s2049_s22  ;;  %v1830_v39 = vpop.f32.mrb[19].mxu1 }
 0xb40   :  { %v1525_v44 = vpop.permute.xlu0 %1524 }
 0xb41   :  { %v1536_v45 = vsel %vm1535_vm4, %v1533_v43, %v1525_v44 }
 0xb42   :  { %1839 = vmatprep.mubr.msk.f32.mxu0 %vm78_vm0, %v1536_v45 }
 0xb4d   :  { %v1527_v17 = vpop.permute.xlu1 %1526 }
 0xb4e   :  { %v1537_v50 = vsel %vm1535_vm4, %v1534_v49, %v1527_v17 }
 0xb4f   :  { %1840 = vmatmul.mubr.msk.f32.vlgmr.msra.gmra.mrb[14].mxu0 %vm78_vm0, %v1537_v50 }
 0xb50   :  { %1989 = shalt.err (!%p1986_p0)
}
 0xb51   :  { %s1990_s29 = scalar_lea.hbm %s2353_s6, 1024 }
 0xb52   :  { %p1991_p1 = scmp.ne.s32.totalorder %s2353_s6, %s1990_s29  ;;  %p1994_p2 = scmp.lt.u32.totalorder %s1990_s29, %s2353_s6 }
 0xb54   :  { %p1996_p3 = pnand %p1994_p2, %p1991_p1 }
 0xb56   :  { %1999 = shalt.err (!%p1996_p3)
}
 0xb57   :  { %1655 = dma.vmem_to_hbm [thread:$0]  %s1650_s25, 1024, %s2353_s6, [#allocation10], %s2032_s9, %s2032_s9, %s2033_s10  }
 0xb58   :  { %v1693_v56 = vld [vmem:[%s2351_s4] ss:$0 sm:$0xff]  ;;  %s2051_s2 = smov [#allocation8]  }
 0xb59   :  { %s1637_s13 = sshll.u32 %s2051_s2, 4  ;;  %s1638_s13 = int_to_ptr.vmem [resolvable:$true] %s1637_s13 }
 0xb5a   :  { %s2000_s14 = scalar_lea.vmem %s1638_s13, 256  ;;  %p2005_p5 = scmp.lt.s32.totalorder %s1638_s13, %s1638_s13 }
 0xb5b   :  { %p2001_p4 = scmp.ne.s32.totalorder %s1638_s13, %s2000_s14  ;;  %p2006_p6 = scmp.lt.s32.totalorder %s2000_s14, %s2000_s14 }
 0xb5d   :  { %p2007_p7 = por %p2006_p6, %p2005_p5 }
 0xb5f   :  { %p2008_p8 = pnand %p2007_p7, %p2001_p4 }
 0xc22   :  { %v1841_v58 = vpop.f32.mrb[14].mxu0 }
 0xc23   :  { %v1627_v51 = vadd.f32 %v1841_v58, %v1693_v56  ;;  %v1621_v52 = vpop.f32.mrb[15].mxu0 }
 0xc24   :  { %v1622_v53 = vadd.f32 %v1693_v56, %v1621_v52 }
 0xc25   :  { %1631 = vst.msk [vmem:[#allocation8 + $0x8] sm:$0xff] %vm78_vm0, %v1627_v51 }
 0xc26   :  { %1630 = vst.msk [vmem:[#allocation8] sm:$0xff] %vm78_vm0, %v1622_v53 }
 0xc27   :  { %2011 = shalt.err (!%p2008_p8)
}
 0xc28   :  { %s2012_s15 = scalar_lea.hbm %s2352_s5, 256 }
 0xc29   :  { %p2013_p9 = scmp.ne.s32.totalorder %s2352_s5, %s2012_s15  ;;  %p2016_p10 = scmp.lt.u32.totalorder %s2012_s15, %s2352_s5 }
 0xc2b   :  { %p2018_p11 = pnand %p2016_p10, %p2013_p9 }
 0xc2d   :  { %2021 = shalt.err (!%p2018_p11)
}
 0xc2e   :  { %1643 = dma.vmem_to_hbm [thread:$0]  %s1638_s13, 256, %s2352_s5, [#allocation4], %s2032_s9, %s2032_s9, %s2033_s10  }
 0xc2f   :  { %2026 = dma.done.wait [#allocation4], 256  }
 0xc30   :  { %2027 = vsyncadd [#allocation4], 4294967040 }
 0xc31   :  { %2028 = dma.done.wait [#allocation10], 1024  }
 0xc32   :  { %2029 = vsyncadd [#allocation10], 4294966272 }
 0xc33   :  { %1662 = vsyncpa [#allocation3], 1 }
 0xc34   :  { %1663 = vsyncpa [#allocation6], 1 }
 0xc35   :  { %1664 = vsyncpa [#allocation4], 1 }
 0xc36   :  { %1665 = vsyncpa [#allocation10], 1 }

</bundles_post_ra>
